<compile_context>
chip_gen: v6e
topology: v6e:2x2x1
jax: 0.10.0
libtpu: 0.0.40
codegen_flags: <defaults>
</compile_context>

<pallas_src>
import functools

import jax
import jax.numpy as jnp
from jax.experimental import pallas as pl
from jax.experimental.pallas import tpu as pltpu

_LANE = 128  # lane width of a vreg


def _vmem_capacity_bytes():
    """Per-core VMEM capacity, with a conservative (v7x) fallback."""
    try:
        cap = int(pltpu.get_tpu_info().vmem_capacity_bytes)
        if cap > 0:
            return cap
    except Exception:
        pass
    return 64 * 1024 * 1024  # v7x per-TC VMEM; conservative on v5e/v6e


def _batchnorm_kernel(x_ref, gamma_ref, beta_ref, o_ref, *, eps, inv_n, tn):
    """Batch-norm over axis 0 of one (n_batch, TN) lane-tile.

    Two-pass, f32-accumulated mean/variance (numerically robust), with the
    affine folded into a single per-neuron scale so the full-tile VPU work is
    x - mu, (x-mu)^2 (reduction), and one fused scale+shift pass.  rsqrt rides
    the EUP slot.
    """
    j = pl.program_id(0)
    col = pl.multiple_of(j * tn, _LANE)

    x = x_ref[...].astype(jnp.float32)                        # (B, TN)
    mu = jnp.sum(x, axis=0, keepdims=True) * inv_n            # (1, TN)
    xc = x - mu                                               # (B, TN)
    var = jnp.sum(xc * xc, axis=0, keepdims=True) * inv_n     # biased variance
    inv_std = jax.lax.rsqrt(var + eps)                        # EUP, (1, TN)

    gamma = gamma_ref[:, pl.ds(col, tn)].astype(jnp.float32)  # (1, TN)
    beta = beta_ref[:, pl.ds(col, tn)].astype(jnp.float32)    # (1, TN)
    scale = gamma * inv_std                                   # folded affine

    o_ref[...] = (xc * scale + beta).astype(o_ref.dtype)


def custom_batchnorm(x, gamma, beta, eps=1e-5):
    """Forward pass of CustomBatchNormAutograd.

    Args:
      x:     (n_batch, n_neurons) float array
      gamma: (n_neurons,) scale
      beta:  (n_neurons,) shift
      eps:   stability constant added to the variance
    Returns:
      (n_batch, n_neurons) batch-normalized output, same dtype as x.
    """
    if x.ndim != 2:
        raise Exception(f"Expected 2D input (n_batch, n_neurons), got {x.shape}")
    n_batch, n_neurons = x.shape
    if gamma.shape[0] != n_neurons or beta.shape[0] != n_neurons:
        raise Exception(
            f"Size DOES matter! Received {x.shape}, expected {gamma.shape[0]}"
        )

    itemsize = jnp.dtype(x.dtype).itemsize
    n_lane_blocks = pl.cdiv(n_neurons, _LANE)

    # ---- neuron-axis tiling: lane-dense, VMEM-budget driven -----------------
    cap = _vmem_capacity_bytes()                       # 128 MiB v5e/v6e, 64 MiB v7x
    vmem_limit = min(cap * 3 // 4, 100 * 1024 * 1024)  # scoped-VMEM limit we request
    tile_budget = vmem_limit * 3 // 5                  # headroom for compiler scratch

    # Bytes per lane-column of working set: double-buffered input + output tile
    # in the input dtype, plus ~2 live f32 intermediates (x_f32 / centered).
    per_lane_bytes = n_batch * (4 * itemsize + 2 * 4)
    tn_vmem = max(_LANE, (tile_budget // per_lane_bytes) // _LANE * _LANE)

    # Keep >= min(4, #lane-blocks) grid tiles so v7x's two TensorCores both get
    # work (harmless on single-TC v5e/v6e); otherwise take the biggest tile the
    # VMEM budget allows (fewer grid steps -> closer to HBM roofline).
    target_tiles = min(4, n_lane_blocks)
    tn_split = max(_LANE, (n_lane_blocks // target_tiles) * _LANE)

    tn = min(tn_vmem, tn_split)
    grid = pl.cdiv(n_neurons, tn)
    # TODO(synk): if n_batch is so large that a single (n_batch, 128) column
    # overflows the VMEM budget (tn_vmem pinned at 128), switch to a two-phase
    # scheme (kernel 1: per-neuron partial sums, kernel 2: normalize).

    # gamma/beta are tiny: pad once to grid*tn so the in-kernel dynamic slice is
    # always in-bounds, and keep the whole row resident across all grid steps.
    n_param = grid * tn
    gamma2d = jnp.pad(
        gamma.reshape(1, n_neurons), ((0, 0), (0, n_param - n_neurons)),
        constant_values=1.0)
    beta2d = jnp.pad(
        beta.reshape(1, n_neurons), ((0, 0), (0, n_param - n_neurons)))

    kernel = functools.partial(
        _batchnorm_kernel, eps=float(eps), inv_n=1.0 / n_batch, tn=tn)

    out = pl.pallas_call(
        kernel,
        out_shape=jax.ShapeDtypeStruct((n_batch, n_neurons), x.dtype),
        grid=(grid,),
        in_specs=[
            pl.BlockSpec((n_batch, tn), lambda j: (0, j)),
            pl.BlockSpec((1, n_param), lambda j: (0, 0)),  # resident, no re-DMA
            pl.BlockSpec((1, n_param), lambda j: (0, 0)),  # resident, no re-DMA
        ],
        out_specs=pl.BlockSpec((n_batch, tn), lambda j: (0, j)),
        compiler_params=pltpu.CompilerParams(
            dimension_semantics=("parallel",),
            vmem_limit_bytes=int(vmem_limit),
        ),
    )(x, gamma2d, beta2d)
    return out


def _reference(x, gamma, beta, eps):
    mu = x.mean(axis=0)
    var = x.var(axis=0)  # biased, matches torch.var(unbiased=False)
    return gamma * ((x - mu) / jnp.sqrt(var + eps)) + beta


if __name__ == "__main__":
    key = jax.random.PRNGKey(0)

    # ---- test 1: module-default parameters, small MLP-ish shape -------------
    n_batch, n_neurons = 8, 32
    k1, k2, k3 = jax.random.split(key, 3)
    x = jax.random.normal(k1, (n_batch, n_neurons), dtype=jnp.float32)
    gamma = jnp.ones((n_neurons,), dtype=jnp.float32)   # nn.Parameter(torch.ones)
    beta = jnp.zeros((n_neurons,), dtype=jnp.float32)   # nn.Parameter(torch.zeros)

    out = jax.block_until_ready(custom_batchnorm(x, gamma, beta, eps=1e-5))
    ref = _reference(x, gamma, beta, 1e-5)
    assert out.shape == (n_batch, n_neurons)
    assert jnp.allclose(out, ref, atol=1e-5, rtol=1e-5), "mismatch vs reference (small)"

    # ---- test 2: multi-tile grid + ragged (non-multiple-of-128) neuron axis --
    nb2, nn2 = 64, 200
    x2 = jax.random.normal(k2, (nb2, nn2), dtype=jnp.float32)
    g2 = 1.0 + 0.1 * jax.random.normal(k3, (nn2,), dtype=jnp.float32)
    b2 = 0.1 * jax.random.normal(jax.random.PRNGKey(1), (nn2,), dtype=jnp.float32)

    out2 = jax.block_until_ready(custom_batchnorm(x2, g2, b2, eps=1e-5))
    ref2 = _reference(x2, g2, b2, 1e-5)
    assert out2.shape == (nb2, nn2)
    assert jnp.allclose(out2, ref2, atol=1e-4, rtol=1e-4), "mismatch vs reference (ragged)"

    print("KERNEL_OK")
</pallas_src>

<mosaic_0001>
module attributes {stable_mosaic.version = 11 : i64} {
  func.func @_batchnorm_kernel(%arg0: i32, %arg1: memref<8x128xf32, #tpu.memory_space<vmem>>, %arg2: memref<1x128xf32, #tpu.memory_space<vmem>>, %arg3: memref<1x128xf32, #tpu.memory_space<vmem>>, %arg4: memref<8x128xf32, #tpu.memory_space<vmem>>) attributes {dimension_semantics = [#tpu.dimension_semantics<parallel>], iteration_bounds = array<i64: 1>, scalar_prefetch = 0 : i64, scratch_operands = 0 : i64, tpu.core_type = #tpu.core_type<tc>, window_params = [{transform_indices = @transform_0, window_bounds = array<i64: 8, 128>}, {pipeline_mode = #tpu.pipeline_mode<synchronous>, transform_indices = @transform_1, window_bounds = array<i64: 1, 128>}, {pipeline_mode = #tpu.pipeline_mode<synchronous>, transform_indices = @transform_2, window_bounds = array<i64: 1, 128>}, {transform_indices = @transform_3, window_bounds = array<i64: 8, 128>}]} {
    %c128_i32 = arith.constant 128 : i32
    %0 = arith.muli %arg0, %c128_i32 : i32
    %1 = tpu.assume_multiple %0, 128 : i32
    %c0 = arith.constant 0 : index
    %c0_0 = arith.constant 0 : index
    %2 = vector.load %arg1[%c0, %c0_0] : memref<8x128xf32, #tpu.memory_space<vmem>>, vector<8x128xf32>
    %cst = arith.constant dense<0.000000e+00> : vector<128xf32>
    %3 = vector.multi_reduction <add>, %2, %cst [0] : vector<8x128xf32> to vector<128xf32>
    %4 = vector.shape_cast %3 : vector<128xf32> to vector<1x128xf32>
    %cst_1 = arith.constant 1.250000e-01 : f32
    %5 = vector.broadcast %cst_1 : f32 to vector<1x128xf32>
    %6 = arith.mulf %4, %5 : vector<1x128xf32>
    %7 = vector.broadcast %6 : vector<1x128xf32> to vector<8x128xf32>
    %8 = arith.subf %2, %7 : vector<8x128xf32>
    %9 = arith.mulf %8, %8 : vector<8x128xf32>
    %cst_2 = arith.constant dense<0.000000e+00> : vector<128xf32>
    %10 = vector.multi_reduction <add>, %9, %cst_2 [0] : vector<8x128xf32> to vector<128xf32>
    %11 = vector.shape_cast %10 : vector<128xf32> to vector<1x128xf32>
    %cst_3 = arith.constant 1.250000e-01 : f32
    %12 = vector.broadcast %cst_3 : f32 to vector<1x128xf32>
    %13 = arith.mulf %11, %12 : vector<1x128xf32>
    %cst_4 = arith.constant 9.99999974E-6 : f32
    %14 = vector.broadcast %cst_4 : f32 to vector<1x128xf32>
    %15 = arith.addf %13, %14 : vector<1x128xf32>
    %16 = math.rsqrt %15 : vector<1x128xf32>
    %c0_5 = arith.constant 0 : index
    %17 = arith.index_cast %1 : i32 to index
    %18 = vector.load %arg2[%c0_5, %17] : memref<1x128xf32, #tpu.memory_space<vmem>>, vector<1x128xf32>
    %c0_6 = arith.constant 0 : index
    %19 = arith.index_cast %1 : i32 to index
    %20 = vector.load %arg3[%c0_6, %19] : memref<1x128xf32, #tpu.memory_space<vmem>>, vector<1x128xf32>
    %21 = arith.mulf %18, %16 : vector<1x128xf32>
    %22 = vector.broadcast %21 : vector<1x128xf32> to vector<8x128xf32>
    %23 = arith.mulf %8, %22 : vector<8x128xf32>
    %24 = vector.broadcast %20 : vector<1x128xf32> to vector<8x128xf32>
    %25 = arith.addf %23, %24 : vector<8x128xf32>
    %c0_7 = arith.constant 0 : index
    %c0_8 = arith.constant 0 : index
    %26 = vector.load %arg4[%c0_7, %c0_8] : memref<8x128xf32, #tpu.memory_space<vmem>>, vector<8x128xf32>
    tpu.vector_store %arg4[%c0_7, %c0_8], %25 {strides = array<i32>} : memref<8x128xf32, #tpu.memory_space<vmem>>, vector<8x128xf32>,
    return
  }
  func.func @transform_0(%arg0: i32) -> (i32, i32) {
    %c0_i32 = arith.constant 0 : i32
    %c0_i32_0 = arith.constant 0 : i32
    return %c0_i32, %arg0 : i32, i32
  }
  func.func @transform_1(%arg0: i32) -> (i32, i32) {
    %c0_i32 = arith.constant 0 : i32
    %c0_i32_0 = arith.constant 0 : i32
    %c0_i32_1 = arith.constant 0 : i32
    return %c0_i32, %c0_i32_0 : i32, i32
  }
  func.func @transform_2(%arg0: i32) -> (i32, i32) {
    %c0_i32 = arith.constant 0 : i32
    %c0_i32_0 = arith.constant 0 : i32
    %c0_i32_1 = arith.constant 0 : i32
    return %c0_i32, %c0_i32_0 : i32, i32
  }
  func.func @transform_3(%arg0: i32) -> (i32, i32) {
    %c0_i32 = arith.constant 0 : i32
    %c0_i32_0 = arith.constant 0 : i32
    return %c0_i32, %arg0 : i32, i32
  }
}

</mosaic_0001>

<bundles_post_ra>
// kernel: tpu_custom_call.1
= control target key start
LH: loop header
LB: loop body
LE: loop exit
PB: predicated region body
PF: predicated region fallthrough
CT: control target
= control target key end

     0   :  { %8 = vsyncpa [#allocation3], 0  ;;  %s169_s0 = inlined_call_operand.hbm [shape: f32[8,32], index: 0, kind: input, shape index: {}]   ;;  %s170_s1 = inlined_call_operand.vmem [shape: f32[1,128], index: 1, kind: input, shape index: {}]   ;;  %s171_s2 = inlined_call_operand.vmem [shape: f32[1,128], index: 2, kind: input, shape index: {}]   ;;  %s172_s3 = inlined_call_operand.hbm [shape: f32[8,32], index: 3, kind: output, shape index: {}]  }
   0x1   :  { %9 = vsyncpa [#allocation4], 0  ;;  %s135_s12 = smov [#allocation2]  }
   0x2   :  { %s16_s13 = sshll.u32 %s135_s12, 4  ;;  %s17_s13 = int_to_ptr.vmem [resolvable:$true] %s16_s13 }
   0x3   :  { %s99_s14 = scalar_lea.vmem %s17_s13, 128  ;;  %p104_p1 = scmp.lt.s32.totalorder %s17_s13, %s17_s13 }
   0x4   :  { %p100_p0 = scmp.ne.s32.totalorder %s17_s13, %s99_s14  ;;  %p105_p2 = scmp.lt.s32.totalorder %s99_s14, %s99_s14 }
   0x6   :  { %p106_p3 = por %p105_p2, %p104_p1 }
   0x8   :  { %p107_p4 = pnand %p106_p3, %p100_p0 }
   0xa   :  { %110 = shalt.err (!%p107_p4)
}
   0xb   :  { %19 = dma.hbm_to_vmem [thread:$0]  %s169_s0, 128, %s17_s13, [#allocation3]  }
   0xc   :  { %131 = dma.done.wait [#allocation3], 128  }
   0xd   :  { %132 = vsyncadd [#allocation3], 4294967168  ;;  %v28_v0 = vld [vmem:[#allocation2] sm:$0xff]  ;;  %v55_v18 = vlaneseq  ;;  %s136_s20 = smov [#allocation5]  }
   0xe   :  { %v29_v1 = vrot.slane %v28_v0, 4  ;;  %v50_v20 = vld [vmem:[%s170_s1] sm:$0x1]  ;;  %s75_s21 = sshll.u32 %s136_s20, 4  ;;  %s76_s21 = int_to_ptr.vmem [resolvable:$true] %s75_s21 }
   0xf   :  { %v56_v19 = vshrl.u32 %v55_v18, 7  ;;  %v86_v25 = vld [vmem:[%s171_s2] ss:$0 sm:$0xff]  ;;  %s111_s22 = scalar_lea.vmem %s76_s21, 128  ;;  %p116_p6 = scmp.lt.s32.totalorder %s76_s21, %s76_s21 }
  0x10   :  { %v30_v2 = vadd.f32 %v29_v1, %v28_v0  ;;  %p112_p5 = scmp.ne.s32.totalorder %s76_s21, %s111_s22  ;;  %p117_p7 = scmp.lt.s32.totalorder %s111_s22, %s111_s22 }
  0x11   :  { %v57_v21 = vsub.s32 0, %v56_v19 }
  0x12   :  { %v31_v3 = vrot.slane %v30_v2, 2  ;;  %p118_p8 = por %p117_p7, %p116_p6 }
  0x14   :  { %v32_v4 = vadd.f32 %v31_v3, %v30_v2  ;;  %p119_p9 = pnand %p118_p8, %p112_p5 }
  0x16   :  { %v33_v5 = vrot.slane %v32_v4, 1 }
  0x18   :  { %v34_v6 = vadd.f32 %v33_v5, %v32_v4 }
  0x1a   :  { %v35_v7 = vmul.f32 0.125, %v34_v6 }
  0x1c   :  { %v36_v8 = vsub.f32 %v28_v0, %v35_v7 }
  0x1e   :  { %v37_v9 = vmul.f32 %v36_v8, %v36_v8 }
  0x20   :  { %v38_v10 = vrot.slane %v37_v9, 4 }
  0x22   :  { %v39_v11 = vadd.f32 %v38_v10, %v37_v9 }
  0x24   :  { %v40_v12 = vrot.slane %v39_v11, 2 }
  0x26   :  { %v41_v13 = vadd.f32 %v40_v12, %v39_v11 }
  0x28   :  { %v42_v14 = vrot.slane %v41_v13, 1 }
  0x2a   :  { %v43_v15 = vadd.f32 %v42_v14, %v41_v13 }
  0x2c   :  { %v44_v16 = vmul.f32 0.125, %v43_v15 }
  0x2e   :  { %v45_v17 = vadd.f32 1e-05, %v44_v16 }
  0x30   :  { %89 = vrsqrt.f32 %v45_v17 }
  0x3d   :  { %v90_v22 = vpop.eup %89 }
  0x3e   :  { %v53_v23 = vmul.f32 %v90_v22, %v50_v20 }
  0x40   :  { %v58_v24 = vrot.slane %v53_v23, %v57_v21 }
  0x42   :  { %v60_v26 = vmul.f32 %v58_v24, %v36_v8 }
  0x44   :  { %v67_v27 = vadd.f32 %v86_v25, %v60_v26 }
  0x46   :  { %68 = vst [vmem:[#allocation5] sm:$0xff] %v67_v27 }
  0x47   :  { %122 = shalt.err (!%p119_p9)
}
  0x48   :  { %78 = dma.vmem_to_hbm [thread:$0]  %s76_s21, 128, %s172_s3, [#allocation4]  }
  0x49   :  { %133 = dma.done.wait [#allocation4], 128  }
  0x4a   :  { %134 = vsyncadd [#allocation4], 4294967168 }
  0x4b   :  { %82 = vsyncpa [#allocation3], 1 }
  0x4c   :  { %83 = vsyncpa [#allocation4], 1 }

</bundles_post_ra>
